<compile_context>
chip_gen: v6e
topology: v6e:2x2x1
jax: 0.10.0
libtpu: 0.0.40
codegen_flags: <defaults>
</compile_context>

<pallas_src>
import jax
import jax.numpy as jnp
from jax import lax
from jax.experimental import pallas as pl
from jax.experimental.pallas import tpu as pltpu


# ----------------------------------------------------------------------------
# Kernels
# ----------------------------------------------------------------------------

def _channel_op_kernel_3d(x_ref, wt_ref, o_ref):
    """General path. x_ref/o_ref: (nb, C, HW); wt_ref: (C_in, C_out) f32."""
    x = x_ref[...]                                       # input dtype, read once
    hw = x.shape[-1]
    # Global average pool, accumulated in f32 (no full-tile f32 temporary).
    means = jnp.sum(x, axis=-1, dtype=jnp.float32) * (1.0 / hw)       # (nb, C)
    # 1x1 conv (no bias) for all nb batch rows in ONE matmul; weight was
    # pre-transposed/pre-cast in the wrapper -> no per-step cast/transpose.
    logits = jnp.dot(means, wt_ref[...],
                     preferred_element_type=jnp.float32)              # (nb, C)
    gate = jax.nn.sigmoid(logits).astype(x.dtype)                     # (nb, C)
    # Broadcast per-channel gate over spatial dims; modulate in input dtype.
    o_ref[...] = x * gate[:, :, None]


def _channel_op_kernel_2d(x_ref, a_ref, o_ref):
    """Small-C path. x_ref/o_ref: (nb*C, HW); a_ref: (nb*C, nb*C) = I_nb (x) W, f32."""
    x = x_ref[...]
    hw = x.shape[-1]
    means = jnp.sum(x, axis=-1, keepdims=True,
                    dtype=jnp.float32) * (1.0 / hw)                   # (nb*C, 1)
    # Block-diagonal weight keeps the gate in the flattened (batch*channel)
    # sublane layout -> no in-kernel reshapes, no sublane padding for tiny C.
    logits = jnp.dot(a_ref[...], means,
                     preferred_element_type=jnp.float32)              # (nb*C, 1)
    gate = jax.nn.sigmoid(logits).astype(x.dtype)
    o_ref[...] = x * gate


# ----------------------------------------------------------------------------
# Budget / tiling helpers
# ----------------------------------------------------------------------------

def _round_up(a, b):
    return (a + b - 1) // b * b


def _sublane_packing(dtype):
    itemsize = jnp.dtype(dtype).itemsize
    return 8 * max(1, 4 // itemsize)      # 8 (f32), 16 (bf16/f16), 32 (int8)


def _default_budgets():
    """Derive VMEM budgets from the chip (64 MiB/TC on v7x, 128 MiB on v5e/v6e)."""
    cap = None
    try:
        cap = getattr(pltpu.get_tpu_info(), "vmem_capacity_bytes", None)
    except Exception:
        cap = None
    if not cap:
        cap = 64 * 1024 * 1024            # conservative: v7x per-TensorCore VMEM
    vmem_limit = min(cap * 3 // 4, 100 * 1024 * 1024)   # headroom for Mosaic scratch
    tile_budget = vmem_limit * 2 // 3
    return int(vmem_limit), int(tile_budget)


def _resolve_budgets(vmem_limit_bytes, tile_budget_bytes):
    d_limit, d_tile = _default_budgets()
    if vmem_limit_bytes is None:
        vmem_limit_bytes = d_limit
    if tile_budget_bytes is None:
        tile_budget_bytes = min(d_tile, vmem_limit_bytes * 2 // 3)
    return int(vmem_limit_bytes), int(tile_budget_bytes)


def _pick_nb(N, min_steps, fits, valid=None):
    """Largest divisor nb of N giving >= min_steps grid steps that fits the budget."""
    best = None
    for nb in range(1, N + 1):
        if N % nb != 0:
            continue
        if N // nb < min_steps:
            continue
        if valid is not None and not valid(nb):
            continue
        if not fits(nb):
            continue
        best = nb
    return best


# ----------------------------------------------------------------------------
# Wrappers
# ----------------------------------------------------------------------------

def _channel_op_3d(x_nchw, wt_f32, nb, vmem_limit_bytes):
    N, C, H, W = x_nchw.shape
    HW = H * W
    x = x_nchw.reshape(N, C, HW)
    out = pl.pallas_call(
        _channel_op_kernel_3d,
        out_shape=jax.ShapeDtypeStruct((N, C, HW), x_nchw.dtype),
        grid_spec=pltpu.PrefetchScalarGridSpec(
            num_scalar_prefetch=0,
            grid=(N // nb,),
            in_specs=[
                # (C, HW) are full dims -> (8,128) block rule satisfied always.
                pl.BlockSpec((nb, C, HW), lambda n: (n, 0, 0)),
                # Shared (resident) conv weight, block index constant -> no re-DMA.
                pl.BlockSpec((C, C), lambda n: (0, 0)),
            ],
            out_specs=pl.BlockSpec((nb, C, HW), lambda n: (n, 0, 0)),
        ),
        compiler_params=pltpu.CompilerParams(
            dimension_semantics=("parallel",),
            vmem_limit_bytes=vmem_limit_bytes,
        ),
    )(x, wt_f32)
    return out.reshape(N, C, H, W)


def _channel_op_2d(x_nchw, w_cc, nb, vmem_limit_bytes):
    N, C, H, W = x_nchw.shape
    HW = H * W
    rows = nb * C
    x2 = x_nchw.reshape(N * C, HW)
    # Block-diagonal I_nb (x) W so the gate matvec works directly on the
    # flattened (batch*channel) column of means (no in-kernel regrouping).
    a = jnp.kron(jnp.eye(nb, dtype=jnp.float32),
                 jnp.asarray(w_cc, dtype=jnp.float32))            # (rows, rows)
    out = pl.pallas_call(
        _channel_op_kernel_2d,
        out_shape=jax.ShapeDtypeStruct((N * C, HW), x_nchw.dtype),
        grid_spec=pltpu.PrefetchScalarGridSpec(
            num_scalar_prefetch=0,
            grid=(N // nb,),
            in_specs=[
                pl.BlockSpec((rows, HW), lambda n: (n, 0)),
                pl.BlockSpec((rows, rows), lambda n: (0, 0)),
            ],
            out_specs=pl.BlockSpec((rows, HW), lambda n: (n, 0)),
        ),
        compiler_params=pltpu.CompilerParams(
            dimension_semantics=("parallel",),
            vmem_limit_bytes=vmem_limit_bytes,
        ),
    )(x2, a)
    return out.reshape(N, C, H, W)


def _channel_op_two_pass(x_nchw, wt_f32, vmem_limit_bytes, tile_budget_bytes):
    """Fallback for activations whose whole (C, HW) slab does not fit VMEM."""
    N, C, H, W = x_nchw.shape
    HW = H * W
    dtype = x_nchw.dtype
    itemsize = jnp.dtype(dtype).itemsize
    packing = _sublane_packing(dtype)
    c_pad = _round_up(C, packing)
    hw_pad = _round_up(HW, 128)

    # Spatial tile: largest 128-multiple whose (in + out, double-buffered,
    # plus temporaries) footprint fits the budget; at least one lane tile.
    ts = (tile_budget_bytes // max(1, 5 * c_pad * itemsize)) // 128 * 128
    ts = max(128, min(ts, hw_pad))
    n_sp = pl.cdiv(HW, ts)

    x3 = x_nchw.reshape(N, C, HW)

    # ---- pass 1: spatially tiled masked partial sums -> (N, 1, C) f32 ----
    def sum_kernel(x_ref, o_ref):
        s = pl.program_id(1)

        @pl.when(s == 0)
        def _init():
            o_ref[...] = jnp.zeros_like(o_ref)

        x_blk = x_ref[...]                                   # (1, C, ts)
        pos = s * ts + lax.broadcasted_iota(jnp.int32, x_blk.shape, 2)
        x_m = jnp.where(pos < HW, x_blk, jnp.zeros_like(x_blk))
        o_ref[...] += jnp.sum(x_m, axis=-1, dtype=jnp.float32)[:, None, :]

    sums = pl.pallas_call(
        sum_kernel,
        out_shape=jax.ShapeDtypeStruct((N, 1, C), jnp.float32),
        grid_spec=pltpu.PrefetchScalarGridSpec(
            num_scalar_prefetch=0,
            grid=(N, n_sp),                       # reduction axis last
            in_specs=[pl.BlockSpec((1, C, ts), lambda n, s: (n, 0, s))],
            out_specs=pl.BlockSpec((1, 1, C), lambda n, s: (n, 0, 0)),
        ),
        compiler_params=pltpu.CompilerParams(
            dimension_semantics=("parallel", "arbitrary"),
            vmem_limit_bytes=vmem_limit_bytes,
        ),
    )(x3)

    # Tiny gate computation in plain JAX.
    means = sums.reshape(N, C) * (1.0 / HW)
    gate = jax.nn.sigmoid(jnp.dot(means, wt_f32)).astype(dtype).reshape(N, C, 1)

    # ---- pass 2: spatially tiled modulate ----
    def mod_kernel(x_ref, g_ref, o_ref):
        o_ref[...] = x_ref[...] * g_ref[...]

    out = pl.pallas_call(
        mod_kernel,
        out_shape=jax.ShapeDtypeStruct((N, C, HW), dtype),
        grid_spec=pltpu.PrefetchScalarGridSpec(
            num_scalar_prefetch=0,
            grid=(N, n_sp),
            in_specs=[
                pl.BlockSpec((1, C, ts), lambda n, s: (n, 0, s)),
                pl.BlockSpec((1, C, 1), lambda n, s: (n, 0, 0)),
            ],
            out_specs=pl.BlockSpec((1, C, ts), lambda n, s: (n, 0, s)),
        ),
        compiler_params=pltpu.CompilerParams(
            dimension_semantics=("parallel", "parallel"),
            vmem_limit_bytes=vmem_limit_bytes,
        ),
    )(x3, gate)
    return out.reshape(N, C, H, W)


def channel_operation(x_nchw, w_cc, *, vmem_limit_bytes=None, tile_budget_bytes=None):
    """x_nchw: (N, C, H, W); w_cc: (C_out, C_in) squeezed Conv2d(dim,dim,1) weight."""
    N, C, H, W = x_nchw.shape
    HW = H * W
    dtype = x_nchw.dtype
    itemsize = jnp.dtype(dtype).itemsize
    packing = _sublane_packing(dtype)
    c_pad = _round_up(C, packing)
    hw_pad = _round_up(HW, 128)

    vmem_limit_bytes, tile_budget_bytes = _resolve_budgets(
        vmem_limit_bytes, tile_budget_bytes)

    # Pre-transpose + pre-cast the weight once (kernel does means @ wt in f32).
    wt_f32 = jnp.asarray(w_cc, dtype=jnp.float32).T                 # (C_in, C_out)

    # Keep >= 4 grid steps when N allows: BlockSpec pipelining only overlaps
    # across grid steps, and a grid of length 1 would idle one v7x TensorCore.
    min_steps = min(N, 4)

    # ---- small-C flattened (N*C, HW) path (no sublane padding) ----
    if C < packing:
        def fits2d(nb):
            tile = nb * C * hw_pad * itemsize
            kron_w = 2 * (nb * C) * (nb * C) * 4       # double-buffered I(x)W
            return 5 * tile + kron_w <= tile_budget_bytes

        nb2 = _pick_nb(N, min_steps, fits2d,
                       valid=lambda nb: (nb * C) % packing == 0)
        if nb2 is not None:
            return _channel_op_2d(x_nchw, w_cc, nb2, vmem_limit_bytes)

    # ---- general (N, C, HW) path ----
    def fits3d(nb):
        tile = nb * c_pad * hw_pad * itemsize          # sublane/lane padded
        return 5 * tile + 2 * C * C * 4 <= tile_budget_bytes

    nb3 = _pick_nb(N, min_steps, fits3d)
    if nb3 is not None:
        return _channel_op_3d(x_nchw, wt_f32, nb3, vmem_limit_bytes)

    # ---- even a single-batch (C, HW) slab does not fit: two-pass fallback ----
    return _channel_op_two_pass(x_nchw, wt_f32, vmem_limit_bytes, tile_budget_bytes)


# ----------------------------------------------------------------------------
# Reference + self-test
# ----------------------------------------------------------------------------

def channel_operation_ref(x_nchw, w_cc):
    xf = x_nchw.astype(jnp.float32)
    mean = jnp.mean(xf, axis=(2, 3))                              # (N, C)
    s = mean @ w_cc.astype(jnp.float32).T                         # (N, C)
    gate = jax.nn.sigmoid(s)[:, :, None, None]                    # (N, C, 1, 1)
    return (xf * gate).astype(x_nchw.dtype)


if __name__ == "__main__":
    key = jax.random.PRNGKey(0)

    def make_case(k, N, C, H, W, dtype):
        kx, kw = jax.random.split(k)
        x = jax.random.normal(kx, (N, C, H, W), dtype=jnp.float32).astype(dtype)
        w = jax.random.normal(kw, (C, C), dtype=jnp.float32) / jnp.sqrt(float(C))
        return x, w

    cases = [
        # (name, N, C, H, W, dtype, kwargs)
        ("spec_f32_3d",       2,  4, 16, 16, jnp.float32,  {}),
        ("small_c_f32_2d",    8,  4,  8, 16, jnp.float32,  {}),
        ("bf16_3d",           8, 16,  8, 16, jnp.bfloat16, {}),
        # Tiny budget forces the two-pass fallback (and masked spatial tail).
        ("two_pass_fallback", 2,  8, 16, 33, jnp.float32,
         {"tile_budget_bytes": 32 * 1024}),
    ]

    keys = jax.random.split(key, len(cases))
    for (name, N, C, H, W, dtype, kw), k in zip(cases, keys):
        x, w = make_case(k, N, C, H, W, dtype)
        out = jax.block_until_ready(channel_operation(x, w, **kw))
        ref = channel_operation_ref(x, w)
        assert out.shape == x.shape and out.dtype == x.dtype, name
        tol = 1e-5 if dtype == jnp.float32 else 2e-2
        ok = jnp.allclose(out.astype(jnp.float32), ref.astype(jnp.float32),
                          atol=tol, rtol=tol)
        assert bool(ok), f"mismatch vs reference in case {name}"

    print("KERNEL_OK")
</pallas_src>

<mosaic_0001>
module attributes {stable_mosaic.version = 11 : i64} {
  func.func @_channel_op_kernel_3d(%arg0: i32, %arg1: memref<1x4x256xf32, #tpu.memory_space<vmem>>, %arg2: memref<4x4xf32, #tpu.memory_space<vmem>>, %arg3: memref<1x4x256xf32, #tpu.memory_space<vmem>>) attributes {dimension_semantics = [#tpu.dimension_semantics<parallel>], iteration_bounds = array<i64: 2>, scalar_prefetch = 0 : i64, scratch_operands = 0 : i64, tpu.core_type = #tpu.core_type<tc>, window_params = [{transform_indices = @transform_0, window_bounds = array<i64: 1, 4, 256>}, {pipeline_mode = #tpu.pipeline_mode<synchronous>, transform_indices = @transform_1, window_bounds = array<i64: 4, 4>}, {transform_indices = @transform_2, window_bounds = array<i64: 1, 4, 256>}]} {
    %c0 = arith.constant 0 : index
    %c0_0 = arith.constant 0 : index
    %c0_1 = arith.constant 0 : index
    %0 = vector.load %arg1[%c0, %c0_0, %c0_1] : memref<1x4x256xf32, #tpu.memory_space<vmem>>, vector<1x4x256xf32>
    %cst = arith.constant dense<0.000000e+00> : vector<1x4xf32>
    %1 = vector.multi_reduction <add>, %0, %cst [2] : vector<1x4x256xf32> to vector<1x4xf32>
    %cst_2 = arith.constant 3.906250e-03 : f32
    %2 = vector.broadcast %cst_2 : f32 to vector<1x4xf32>
    %3 = arith.mulf %1, %2 : vector<1x4xf32>
    %c0_3 = arith.constant 0 : index
    %c0_4 = arith.constant 0 : index
    %4 = vector.load %arg2[%c0_3, %c0_4] : memref<4x4xf32, #tpu.memory_space<vmem>>, vector<4x4xf32>
    %cst_5 = arith.constant dense<0.000000e+00> : vector<1x4xf32>
    %5 = tpu.matmul %3, %4, %cst_5 {dimension_numbers = #tpu.dot_dimension_numbers<[1], [0], [0], [1], [0, 0, 1, 1], [], []>} : vector<1x4xf32>, vector<4x4xf32>, vector<1x4xf32> -> vector<1x4xf32>
    %6 = arith.negf %5 : vector<1x4xf32>
    %7 = math.exp %6 : vector<1x4xf32>
    %cst_6 = arith.constant 1.000000e+00 : f32
    %8 = vector.broadcast %cst_6 : f32 to vector<1x4xf32>
    %9 = arith.addf %8, %7 : vector<1x4xf32>
    %10 = arith.divf %8, %9 : vector<1x4xf32>
    %11 = vector.shape_cast %10 : vector<1x4xf32> to vector<1x4x1xf32>
    %12 = vector.broadcast %11 : vector<1x4x1xf32> to vector<1x4x256xf32>
    %13 = arith.mulf %0, %12 : vector<1x4x256xf32>
    %c0_7 = arith.constant 0 : index
    %c0_8 = arith.constant 0 : index
    %c0_9 = arith.constant 0 : index
    %14 = vector.load %arg3[%c0_7, %c0_8, %c0_9] : memref<1x4x256xf32, #tpu.memory_space<vmem>>, vector<1x4x256xf32>
    tpu.vector_store %arg3[%c0_7, %c0_8, %c0_9], %13 {strides = array<i32>} : memref<1x4x256xf32, #tpu.memory_space<vmem>>, vector<1x4x256xf32>,
    return
  }
  func.func @transform_0(%arg0: i32) -> (i32, i32, i32) {
    %c0_i32 = arith.constant 0 : i32
    %c0_i32_0 = arith.constant 0 : i32
    %c0_i32_1 = arith.constant 0 : i32
    return %arg0, %c0_i32, %c0_i32_0 : i32, i32, i32
  }
  func.func @transform_1(%arg0: i32) -> (i32, i32) {
    %c0_i32 = arith.constant 0 : i32
    %c0_i32_0 = arith.constant 0 : i32
    %c0_i32_1 = arith.constant 0 : i32
    return %c0_i32, %c0_i32_0 : i32, i32
  }
  func.func @transform_2(%arg0: i32) -> (i32, i32, i32) {
    %c0_i32 = arith.constant 0 : i32
    %c0_i32_0 = arith.constant 0 : i32
    %c0_i32_1 = arith.constant 0 : i32
    return %arg0, %c0_i32, %c0_i32_0 : i32, i32, i32
  }
}

</mosaic_0001>

<bundles_post_ra>
// kernel: tpu_custom_call.1
= control target key start
LH: loop header
LB: loop body
LE: loop exit
PB: predicated region body
PF: predicated region fallthrough
CT: control target
= control target key end

     0   :  { %7 = vsyncpa [#allocation3], 0  ;;  %s795_s0 = inlined_call_operand.hbm [shape: f32[2,4,256], index: 0, kind: input, shape index: {}]   ;;  %s796_s1 = inlined_call_operand.hbm [shape: f32[4,4], index: 1, kind: input, shape index: {}]   ;;  %s797_s2 = inlined_call_operand.hbm [shape: f32[2,4,256], index: 2, kind: output, shape index: {}]  }
   0x1   :  { %9 = vsyncpa [#allocation3 + $0x1], 0 }
   0x2   :  { %10 = vsyncpa [#allocation6], 0 }
   0x3   :  { %11 = vsyncpa [#allocation4], 0 }
   0x4   :  { %13 = vsyncpa [#allocation4 + $0x1], 0  ;;  %s625_s9 = smov 0   ;;  %s627_s10 = smov 0  }
   0x5   :  { %s629_s11 = smov 0   ;;  %s631_s12 = smov 0  }
   0x6 LB: > { %s646_s13 = sadd.s32 4294967295, %s602_s12   ;;  %s387_s14 = sadd.s32 4294967294, %s602_s12   ;;  %s602_s12 = sphi %s631_s12, %s820_s12   ;;  %s598_s11 = sphi %s629_s11, %s819_s11   ;;  %s594_s10 = sphi %s627_s10, %s818_s10   ;;  %s590_s9 = sphi %s625_s9, %s817_s9  }
   0x7   : > { %p39_p0 = scmp.ne.s32.totalorder %s594_s10, %s590_s9  ;;  %p798_p1 = scmp.eq.s32.totalorder %s646_s13, 0 }
   0x8   : > { %p90_p3 = scmp.eq.s32.totalorder %s387_s14, 1  ;;  %p388_p5 = scmp.ge.s32.totalorder %s602_s12, 1 }
   0x9   : > { %p655_p4 = por %p798_p1, %p39_p0  ;;  %p97_p7 = scmp.lt.s32.totalorder %s602_s12, 3 }
   0xa   : > { %p660_p6 = por %p90_p3, %p39_p0  ;;  %s604_s18 = smov [#allocation5]  }
   0xb   : > { %s802_s15 = scalar_select %p655_p4, 1, 0 }
   0xc   : > { %s803_s16 = scalar_select %p660_p6, 1, 0 }
   0xd   : > { %p665_p8 = pnand %p388_p5, %p97_p7  ;;  %s110_s19 = sshll.u32 %s604_s18, 4  ;;  %s111_s19 = int_to_ptr.vmem [resolvable:$true] %s110_s19 }
   0xe   : > { %s673_s20 = sadd.s32 1, %s602_s12   ;;  %s26_s24 = sadd.s32 1, %s598_s11 }
   0xf   : > { %s804_s17 = scalar_select %p665_p8, 1, 0 }
  0x10   : > { %p423_p10 = pneg %p665_p8  ;;  %s23_s22 = ssub.s32 %s602_s12, %s673_s20 }
  0x11   : > { %p683_p12 = scmp.eq.s32.totalorder %s23_s22, 0  ;;  %p33_p13 = scmp.ne.s32.totalorder %s598_s11, %s594_s10 }
  0x12   : > { %p677_p11 = pnand %p423_p10, %p798_p1  ;;  %s491_s25 = scalar_lea.vmem %s111_s19, 64 }
  0x13   : > { %p492_p3 = scmp.ne.s32.totalorder %s111_s19, %s491_s25  ;;  %p499_p9 = scmp.lt.s32.totalorder %s111_s19, %s111_s19 }
  0x14   : > { %p482_p0 = pneg %p677_p11  ;;  %p500_p2 = scmp.lt.s32.totalorder %s491_s25, %s491_s25 }
  0x16   : > { %p494_p5 = pnand %p492_p3, %p482_p0  ;;  %p501_p10 = por %p500_p2, %p499_p9 }
  0x18   : > { %p495_p7 = pneg %p494_p5 }
  0x1a   : > { %p502_p1 = pnand %p501_p10, %p495_p7 }
  0x1c   : > { %505 = shalt.err (!%p502_p1)
}
  0x1d   : > { %426 = dma.hbm_to_vmem [thread:$0]  (!%p677_p11), %s796_s1, 64, %s111_s19, [#allocation6]  }
  0x1e   : > { %s700_s28 = scalar_select %p683_p12, %s598_s11, %s26_s24  }
  0x1f   : > { %p34_p1 = scmp.eq.s32.totalorder %s602_s12, 0  ;;  %p807_p2 = scmp.eq.s32.totalorder %s646_s13, 1 }
  0x20   : > { %p436_p0 = scmp.lt.s32.totalorder %s602_s12, 2  ;;  %s121_s30 = sand.u32 1, %s598_s11  }
  0x21   : > { %p708_p9 = por %p807_p2, %p33_p13  ;;  %p35_p3 = por %p34_p1, %p33_p13 }
  0x22   : > { %s391_s3 = sshll.u32 %s121_s30, 3  ;;  %s406_s4 = sshll.u32 %s602_s12, 7 }
  0x23   : > { %s808_s29 = scalar_select %p708_p9, 1, 0 }
  0x24   : > { %s721_s7 = scalar_lea.hbm %s795_s0, %s406_s4  ;;  %s125_s8 = scalar_lea.vmem [#allocation2], %s391_s3 }
  0x25   : > { %s133_s14 = sshll.u32 %s125_s8, 4  ;;  %p723_p11 = pnand %p436_p0, %p35_p3  ;;  %s134_s14 = int_to_ptr.vmem [resolvable:$true] %s133_s14 }
  0x26   : > { %s122_s19 = scalar_lea.sflag [#allocation3], %s121_s30  ;;  %s506_s21 = scalar_lea.hbm %s721_s7, 128 }
  0x27   : > { %p507_p12 = scmp.ne.s32.totalorder %s721_s7, %s506_s21  ;;  %p508_p13 = pneg %p723_p11 }
  0x28   : > { %s511_s24 = scalar_lea.hbm %s795_s0, 256  ;;  %p512_p10 = scmp.lt.s32.totalorder %s721_s7, %s795_s0 }
  0x29   : > { %p509_p5 = pnand %p508_p13, %p507_p12  ;;  %p513_p1 = scmp.lt.s32.totalorder %s511_s24, %s506_s21 }
  0x2b   : > { %p510_p7 = pneg %p509_p5  ;;  %p514_p2 = por %p513_p1, %p512_p10 }
  0x2d   : > { %p515_p0 = pnand %p514_p2, %p510_p7 }
  0x2f   : > { %518 = shalt.err (!%p515_p0)
}
  0x30   : > { %s519_s27 = scalar_lea.vmem %s134_s14, 128  ;;  %s605_s30 = smov [#allocation2]  }
  0x31   : > { %p520_p3 = scmp.ne.s32.totalorder %s134_s14, %s519_s27  ;;  %s524_s3 = sshll.u32 %s605_s30, 4  ;;  %s525_s3 = int_to_ptr.vmem [resolvable:$false] %s524_s3 }
  0x32   : > { %s526_s4 = scalar_lea.vmem %s525_s3, 256  ;;  %p527_p12 = scmp.lt.s32.totalorder %s134_s14, %s525_s3 }
  0x33   : > { %p522_p6 = pnand %p520_p3, %p508_p13  ;;  %p528_p5 = scmp.lt.s32.totalorder %s526_s4, %s519_s27 }
  0x35   : > { %p523_p9 = pneg %p522_p6  ;;  %p529_p4 = por %p528_p5, %p527_p12 }
  0x37   : > { %p530_p8 = pnand %p529_p4, %p523_p9 }
  0x39   : > { %533 = shalt.err (!%p530_p8)
}
  0x3a   : > { %430 = dma.hbm_to_vmem [thread:$0]  (!%p723_p11), %s721_s7, 128, %s134_s14, %s122_s19  }
  0x3b   : > { %p810_p7 = scmp.ne.s32.totalorder %s804_s17, 0 }
  0x3c   : > { %s744_s5 = sand.u32 (!%p810_p7), 1, %s594_s10   ;;  %p811_p4 = scmp.ne.s32.totalorder (!%p810_p7), %s802_s15, 0 }
  0x3d   : > { %142 = sbr.rel (%p810_p7) target bundleno = 577 (0x241), region = 28  ;;  %s395_s6 = sshll.u32 (!%p810_p7), %s744_s5, 3 }
  0x3e   : > { %s145_s8 = scalar_lea.sflag (!%p810_p7), [#allocation3], %s744_s5  ;;  %s148_s21 = scalar_lea.vmem (!%p810_p7), [#allocation2], %s395_s6 }
  0x42   : > { %577 = dma.done.wait (%p811_p4), %s145_s8, 128  }
  0x43   : > { %579 = vsyncadd (%p811_p4), %s145_s8, 4294967168  ;;  %p812_p6 = scmp.eq.s32.totalorder %s646_s13, 0 }
  0x45   : > { %581 = dma.done.wait (%p812_p6), [#allocation6], 64   ;;  %p813_p8 = pmov %p812_p6 }
  0x46   : > { %vm177_vm0 = vcmask 1043456   ;;  %v173_v0 = vld [vmem:[%s148_s21] sm:$0xff]  ;;  %v606_v5 = vmov 0.0   ;;  %v184_v6 = vld [vmem:[#allocation5] sm:$0xf]  ;;  %vm607_vm1 = vmmov 0   ;;  %v186_v7 = vlaneseq }
  0x47   : > { %583 = vsyncadd (%p813_p8), [#allocation6], 4294967232  ;;  %v175_v1 = vcombine.high %v173_v0, %v173_v0  ;;  %v178_v2 = vsel %vm177_vm0, %v173_v0, 0.0  ;;  %410 = vmatprep.subr.mxu0 %v606_v5  ;;  %412 = vmatprep.mubr.msk.f32.mxu0 %vm607_vm1, %v606_v5  ;;  %vm192_vm2 = vcmask 31744   ;;  %v608_v22 = vmov 839922192  }
  0x48   : > { %411 = vmatpush3.msk.msra.mxu0 %vm177_vm0, %v184_v6  ;;  %v187_v8 = vand.u32 127, %v186_v7  ;;  %v189_v9 = vshrl.u32 %v186_v7, 7  ;;  %v283_v23 = vunpack.c.l.s4 %v608_v22  ;;  %s407_s15 = sshll.u32 %s646_s13, 7  ;;  %s172_s17 = scalar_lea.vmem [#allocation7], %s395_s6 }
  0x49   : > { %v179_v3 = vsel %vm177_vm0, %v175_v1, 0.0  ;;  %s307_s7 = sshll.u32 %s172_s17, 4  ;;  %s305_s19 = scalar_lea.hbm %s797_s2, %s407_s15  ;;  %s308_s7 = int_to_ptr.vmem [resolvable:$true] %s307_s7 }
  0x4a   : > { %v180_v4 = vadd.f32 %v179_v3, %v178_v2  ;;  %v190_v10 = vsub.s32 %v187_v8, %v189_v9  ;;  %v276_v19 = vsub.s32 0, %v189_v9  ;;  %v284_v24 = vunpack.c.0.s8 %v283_v23  ;;  %s293_s22 = scalar_lea.sflag [#allocation4], %s744_s5  ;;  %s534_s23 = scalar_lea.vmem %s308_s7, 128 }
  0x4b   : > { %p535_p9 = scmp.ne.s32.totalorder %s308_s7, %s534_s23  ;;  %p814_p11 = scmp.ne.s32.totalorder %s808_s29, 0 }
  0x4c   : > { %181 = vadd.xlane.f32.xlu0 %v180_v4  ;;  %v287_v25 = vsub.s32 %v284_v24, %v189_v9  ;;  %s609_s24 = smov [#allocation7]  }
  0x4d   : > { %p536_p13 = pnand %p535_p9, %p814_p11  ;;  %s538_s25 = sshll.u32 %s609_s24, 4  ;;  %s539_s25 = int_to_ptr.vmem [resolvable:$false] %s538_s25 }
  0x4e   : > { %s540_s13 = scalar_lea.vmem %s539_s25, 256  ;;  %p541_p1 = scmp.lt.s32.totalorder %s308_s7, %s539_s25 }
  0x4f   : > { %p537_p10 = pneg %p536_p13  ;;  %p542_p2 = scmp.lt.s32.totalorder %s540_s13, %s534_s23 }
  0x51   : > { %p543_p0 = por %p542_p2, %p541_p1 }
  0x53   : > { %p544_p3 = pnand %p543_p0, %p537_p10 }
  0xd5   : > { %v182_v11 = vpop.xlane.xlu0 %181 }
  0xd6   : > { %v183_v12 = vmul.f32 0.00390625, %v182_v11 }
  0xd8   : > { %v191_v13 = vrot.slane %v183_v12, %v190_v10 }
  0xda   : > { %413 = vmatmul.mubr.msk.f32.vlgmr.msra.gmra.mxu0 %vm192_vm2, %v191_v13 }
 0x19a   : > { %v264_v14 = vpop.f32.mrf.mxu0 }
 0x19b   : > { %v400_v15 = vmul.f32 -1.442695, %v264_v14 }
 0x19c   : > { %v414_v16 = vpop.f32.mrf.mxu0 }
 0x19d   : > { %476 = vpow2.f32 %v400_v15 }
 0x1aa   : > { %v477_v17 = vpop.eup %476 }
 0x1ab   : > { %v271_v18 = vadd.f32 1.0, %v477_v17 }
 0x1ad   : > { %478 = vrcp.f32 %v271_v18 }
 0x1ba   : > { %v479_v20 = vpop.eup %478 }
 0x1bb   : > { %v277_v21 = vrot.slane %v479_v20, %v276_v19 }
 0x1bd   : > { %279 = vbcast.lane.b32.xlu0 %v277_v21, 256 }
 0x22f   : > { %v280_v26 = vpop.permute.xlu0 %279 }
 0x230   : > { %v288_v27 = vrot.slane %v280_v26, %v287_v25 }
 0x232   : > { %v290_v28 = vmul.f32 %v288_v27, %v173_v0 }
 0x234   : > { %291 = vst [vmem:[%s172_s17] sm:$0xff] %v290_v28 }
 0x235   : > { %547 = shalt.err (!%p544_p3)
}
 0x236   : > { %s548_s26 = scalar_lea.hbm %s305_s19, 128  ;;  %s552_s3 = scalar_lea.hbm %s797_s2, 256 }
 0x237   : > { %p549_p12 = scmp.ne.s32.totalorder %s305_s19, %s548_s26  ;;  %p553_p4 = scmp.lt.s32.totalorder %s305_s19, %s797_s2 }
 0x238   : > { %p554_p6 = scmp.lt.s32.totalorder %s552_s3, %s548_s26 }
 0x239   : > { %p550_p5 = pnand %p549_p12, %p814_p11 }
 0x23a   : > { %p555_p8 = por %p554_p6, %p553_p4 }
 0x23b   : > { %p551_p7 = pneg %p550_p5 }
 0x23d   : > { %p556_p9 = pnand %p555_p8, %p551_p7 }
 0x23f   : > { %559 = shalt.err (!%p556_p9)
}
 0x240   : > { %421 = dma.vmem_to_hbm [thread:$0]  (%p814_p11), %s308_s7, 128, %s305_s19, %s293_s22  }
 0x241 PF: > { %s319_s6 = sand.u32 1, %s590_s9   ;;  %p815_p13 = scmp.ne.s32.totalorder %s803_s16, 0 }
 0x242   : > { %p816_p10 = scmp.ge.s32.totalorder %s602_s12, 2  ;;  %s320_s8 = scalar_lea.sflag [#allocation4], %s319_s6 }
 0x244   : > { %p432_p1 = pnand %p816_p10, %p815_p13 }
 0x246   : > { %p433_p2 = pneg %p432_p1 }
 0x248   : > { %585 = dma.done.wait (%p433_p2), %s320_s8, 128  }
 0x249   : > { %587 = vsyncadd (%p433_p2), %s320_s8, 4294967168  ;;  %p16_p0 = scmp.ge.s32.totalorder %s673_s20, 4   ;;  %s817_s9 = smov %s594_s10 }
 0x24a   : > { %s818_s10 = smov %s598_s11  ;;  %s819_s11 = smov %s700_s28 }
 0x24b   : > { %s820_s12 = smov %s673_s20  ;;  %18 = sbr.rel (!%p16_p0) target bundleno = 6 (0x6), region = 77 }
 0x250   :  { %325 = vsyncpa [#allocation3], 1 }
 0x251   :  { %327 = vsyncpa [#allocation3 + $0x1], 1 }
 0x252   :  { %328 = vsyncpa [#allocation6], 1 }
 0x253   :  { %329 = vsyncpa [#allocation4], 1 }
 0x254   :  { %331 = vsyncpa [#allocation4 + $0x1], 1 }

</bundles_post_ra>
